<compile_context>
chip_gen: v5e
topology: v5e:2x2
jax: 0.10.0
libtpu: 0.0.40
codegen_flags: <defaults>
</compile_context>

<pallas_src>
import math
from dataclasses import dataclass

import jax
import jax.numpy as jnp
from jax.experimental import pallas as pl
from jax.experimental.pallas import tpu as pltpu


# ---------------------------------------------------------------------------
# Kernels
# ---------------------------------------------------------------------------
def _gcn_fused_acc_kernel(adj_ref, x_ref, w_ref, bias_ref, o_ref, acc_ref):
    """Grid (i, j, k): acc[i,j] += adj[i,k] @ (x[k] @ W[:, j])."""
    k = pl.program_id(2)

    @pl.when(k == 0)
    def _():
        acc_ref[...] = jnp.zeros_like(acc_ref)

    support = jnp.dot(
        x_ref[...], w_ref[...], preferred_element_type=jnp.float32
    ).astype(jnp.bfloat16)
    acc_ref[...] += jnp.dot(
        adj_ref[...], support, preferred_element_type=jnp.float32
    )

    @pl.when(k == pl.num_programs(2) - 1)
    def _():
        # Bias add + downcast exactly once, at finalize.
        o_ref[...] = (acc_ref[...] + bias_ref[...]).astype(o_ref.dtype)


def _gcn_fused_single_k_kernel(adj_ref, x_ref, w_ref, bias_ref, o_ref):
    """k-grid == 1 fast path: no accumulator scratch, no init/finalize."""
    support = jnp.dot(
        x_ref[...], w_ref[...], preferred_element_type=jnp.float32
    ).astype(jnp.bfloat16)
    out = jnp.dot(adj_ref[...], support, preferred_element_type=jnp.float32)
    o_ref[...] = (out + bias_ref[...]).astype(o_ref.dtype)


# ---------------------------------------------------------------------------
# Planning helpers
# ---------------------------------------------------------------------------
def _round_up(x, m):
    return ((x + m - 1) // m) * m


def _pad2d(a, rows, cols):
    r, c = a.shape
    if (r, c) == (rows, cols):
        return a
    return jnp.pad(a, ((0, rows - r), (0, cols - c)))


def _vmem_budget_bytes():
    """Generation-aware VMEM budget: 8 MiB headroom, never more than 100 MiB."""
    cap = 64 * 1024 * 1024  # conservative default = v7x per-TC VMEM
    try:
        info = pltpu.get_tpu_info()
        cap = int(getattr(info, "vmem_capacity_bytes", cap))
    except Exception:
        pass
    return min(cap - 8 * 1024 * 1024, 100 * 1024 * 1024)


def _fused_footprint_bytes(t, tn, d_in_pad, out_bytes):
    bf16, f32 = 2, 4
    adj_bufs = 2 * t * t * bf16              # double-buffered adj tile
    x_bufs = 2 * t * d_in_pad * bf16         # double-buffered x tile
    w_bufs = 2 * d_in_pad * tn * bf16        # resident weight slice
    bias_bufs = 2 * tn * f32
    acc = t * tn * f32                       # f32 accumulator scratch
    out_bufs = 2 * t * tn * out_bytes        # double-buffered output tile
    return adj_bufs + x_bufs + w_bufs + bias_bufs + acc + out_bufs


@dataclass(frozen=True)
class _GCNPlan:
    n_pad: int
    d_in_pad: int
    d_out_pad: int
    t: int          # square tile on the N x N adjacency (tm == tk)
    tn: int         # output-feature tile
    vmem_limit: int


def _make_plan(n, d_in, d_out, out_dtype, *, max_tile=1024, max_tile_n=512):
    budget = _vmem_budget_bytes()
    out_bytes = jnp.dtype(out_dtype).itemsize

    d_in_pad = _round_up(d_in, 128)
    d_out128 = _round_up(d_out, 128)
    tn = min(d_out128, max_tile_n)
    d_out_pad = _round_up(d_out128, tn)

    n128 = _round_up(n, 128)
    if n128 <= 128:
        g = 1
    else:
        # >= 2 row tiles so the "parallel" i axis can shard across v7x's 2 TCs.
        g = max(2, -(-n128 // max_tile))

    while True:
        t = _round_up(-(-n128 // g), 128)
        if t == 128 or _fused_footprint_bytes(t, tn, d_in_pad, out_bytes) <= budget:
            break
        g += 1

    n_pad = g * t  # pad N up to a multiple of the chosen tile (< 128*g waste)
    return _GCNPlan(n_pad=n_pad, d_in_pad=d_in_pad, d_out_pad=d_out_pad,
                    t=t, tn=tn, vmem_limit=int(budget))


# ---------------------------------------------------------------------------
# Public API
# ---------------------------------------------------------------------------
def prepare_adjacency(adj, d_in, d_out, out_dtype=jnp.float32):
    """Pad + cast the N x N adjacency once; reuse across layers / steps.

    The adjacency is layer-invariant in a GCN, so hoisting this pad/cast out
    of the per-layer forward halves HBM traffic on the dominant operand.
    """
    n = adj.shape[0]
    plan = _make_plan(n, d_in, d_out, out_dtype)
    return _pad2d(adj, plan.n_pad, plan.n_pad).astype(jnp.bfloat16)


def graph_convolution(x, adj, weight, bias=None):
    """GCN layer: adj @ (dropout(x) @ weight) [+ bias], dropout = eval identity.

    x: [N, D_in]; adj: [N, N] (or a prepare_adjacency() result); weight:
    [D_in, D_out]; bias: [D_out] or None.  Returns [N, D_out] in x.dtype.
    """
    n, d_in = x.shape
    d_out = weight.shape[1]
    out_dtype = x.dtype

    plan = _make_plan(n, d_in, d_out, out_dtype)
    t, tn = plan.t, plan.tn
    n_pad, d_in_pad, d_out_pad = plan.n_pad, plan.d_in_pad, plan.d_out_pad

    # bf16 MXU inputs; accumulation stays f32 inside the kernel.
    x_p = _pad2d(x, n_pad, d_in_pad).astype(jnp.bfloat16)
    w_p = _pad2d(weight, d_in_pad, d_out_pad).astype(jnp.bfloat16)

    if adj.dtype == jnp.bfloat16 and adj.shape == (n_pad, n_pad):
        adj_p = adj  # pre-prepared via prepare_adjacency(): skip pad + cast
    else:
        adj_p = _pad2d(adj, n_pad, n_pad).astype(jnp.bfloat16)

    if bias is None:
        b_p = jnp.zeros((1, d_out_pad), jnp.float32)
    else:
        b_p = _pad2d(bias.reshape(1, d_out).astype(jnp.float32), 1, d_out_pad)

    gi = n_pad // t          # row tiles of the output (parallel)
    gj = d_out_pad // tn     # output-feature tiles (parallel)
    gk = n_pad // t          # reduction over neighbor nodes (arbitrary, last)

    out_shape = jax.ShapeDtypeStruct((n_pad, d_out_pad), out_dtype)

    if gk == 1:
        out_p = pl.pallas_call(
            _gcn_fused_single_k_kernel,
            out_shape=out_shape,
            grid=(gi, gj),
            in_specs=[
                pl.BlockSpec((t, t), lambda i, j: (i, 0)),            # adj
                pl.BlockSpec((t, d_in_pad), lambda i, j: (0, 0)),     # x
                pl.BlockSpec((d_in_pad, tn), lambda i, j: (0, j)),    # W
                pl.BlockSpec((1, tn), lambda i, j: (0, j)),           # bias
            ],
            out_specs=pl.BlockSpec((t, tn), lambda i, j: (i, j)),
            compiler_params=pltpu.CompilerParams(
                dimension_semantics=("parallel", "parallel"),
                vmem_limit_bytes=plan.vmem_limit),
        )(adj_p, x_p, w_p, b_p)
    else:
        out_p = pl.pallas_call(
            _gcn_fused_acc_kernel,
            out_shape=out_shape,
            grid=(gi, gj, gk),
            in_specs=[
                pl.BlockSpec((t, t), lambda i, j, k: (i, k)),          # adj
                pl.BlockSpec((t, d_in_pad), lambda i, j, k: (k, 0)),   # x
                pl.BlockSpec((d_in_pad, tn), lambda i, j, k: (0, j)),  # W
                pl.BlockSpec((1, tn), lambda i, j, k: (0, j)),         # bias
            ],
            out_specs=pl.BlockSpec((t, tn), lambda i, j, k: (i, j)),
            scratch_shapes=[pltpu.VMEM((t, tn), jnp.float32)],
            compiler_params=pltpu.CompilerParams(
                dimension_semantics=("parallel", "parallel", "arbitrary"),
                vmem_limit_bytes=plan.vmem_limit),
        )(adj_p, x_p, w_p, b_p)

    return out_p[:n, :d_out]


def xavier_uniform(key, fan_in, fan_out, dtype=jnp.float32):
    bound = math.sqrt(6.0 / (fan_in + fan_out))
    return jax.random.uniform(
        key, (fan_in, fan_out), minval=-bound, maxval=bound, dtype=dtype
    )


# ---------------------------------------------------------------------------
# Demo / correctness check
# ---------------------------------------------------------------------------
def _reference(x, adj, weight, bias):
    """Matched-precision reference: bf16 MXU inputs, f32 accumulation."""
    x_b = x.astype(jnp.bfloat16)
    a_b = adj.astype(jnp.bfloat16)
    w_b = weight.astype(jnp.bfloat16)
    support = jnp.dot(
        x_b, w_b, preferred_element_type=jnp.float32
    ).astype(jnp.bfloat16)
    out = jnp.dot(a_b, support, preferred_element_type=jnp.float32)
    if bias is not None:
        out = out + bias.astype(jnp.float32)
    return out.astype(x.dtype)


def _make_graph(key, n, d_in):
    k_x, k_adj = jax.random.split(key)
    x = jax.random.normal(k_x, (n, d_in), dtype=jnp.float32)
    a_raw = jax.random.uniform(k_adj, (n, n), dtype=jnp.float32)
    adj = (a_raw + a_raw.T) * 0.5
    adj = adj / jnp.sum(adj, axis=-1, keepdims=True)
    return x, adj


if __name__ == "__main__":
    key = jax.random.PRNGKey(0)
    k_g1, k_g2, k_w1, k_w2 = jax.random.split(key, 4)

    # --- Case 1: tiny graph (single-tile fast path), with and without bias ---
    N1, D_IN, D_OUT1 = 64, 32, 16
    x1, adj1 = _make_graph(k_g1, N1, D_IN)
    w1 = xavier_uniform(k_w1, D_IN, D_OUT1)
    bias1 = jnp.zeros((D_OUT1,), dtype=jnp.float32)

    out1 = jax.block_until_ready(graph_convolution(x1, adj1, w1, bias=None))
    out1_b = jax.block_until_ready(graph_convolution(x1, adj1, w1, bias=bias1))
    ref1 = _reference(x1, adj1, w1, None)

    assert out1.shape == (N1, D_OUT1)
    assert jnp.allclose(out1, ref1, atol=1e-2, rtol=1e-2)
    assert jnp.allclose(out1_b, ref1, atol=1e-2, rtol=1e-2)

    # --- Case 2: multi-tile graph (accumulator path, i-grid >= 2) ------------
    N2, D_OUT2 = 320, 48
    x2, adj2 = _make_graph(k_g2, N2, D_IN)
    w2 = xavier_uniform(k_w2, D_IN, D_OUT2)

    out2 = jax.block_until_ready(graph_convolution(x2, adj2, w2, bias=None))
    ref2 = _reference(x2, adj2, w2, None)

    assert out2.shape == (N2, D_OUT2)
    assert jnp.allclose(out2, ref2, atol=1e-2, rtol=1e-2)

    # --- Case 3: cached (pre-padded bf16) adjacency, reused across calls -----
    adj2_prep = prepare_adjacency(adj2, D_IN, D_OUT2, out_dtype=x2.dtype)
    out2_cached = jax.block_until_ready(
        graph_convolution(x2, adj2_prep, w2, bias=None)
    )
    assert jnp.allclose(out2_cached, out2, atol=1e-3, rtol=1e-3)

    print("KERNEL_OK")
</pallas_src>

<mosaic_0001>
module attributes {stable_mosaic.version = 11 : i64} {
  func.func @_gcn_fused_single_k_kernel(%arg0: i32, %arg1: i32, %arg2: memref<128x128xbf16, #tpu.memory_space<vmem>>, %arg3: memref<128x128xbf16, #tpu.memory_space<vmem>>, %arg4: memref<128x128xbf16, #tpu.memory_space<vmem>>, %arg5: memref<1x128xf32, #tpu.memory_space<vmem>>, %arg6: memref<128x128xf32, #tpu.memory_space<vmem>>) attributes {dimension_semantics = [#tpu.dimension_semantics<parallel>, #tpu.dimension_semantics<parallel>], iteration_bounds = array<i64: 1, 1>, scalar_prefetch = 0 : i64, scratch_operands = 0 : i64, tpu.core_type = #tpu.core_type<tc>, window_params = [{transform_indices = @transform_0, window_bounds = array<i64: 128, 128>}, {pipeline_mode = #tpu.pipeline_mode<synchronous>, transform_indices = @transform_1, window_bounds = array<i64: 128, 128>}, {transform_indices = @transform_2, window_bounds = array<i64: 128, 128>}, {transform_indices = @transform_3, window_bounds = array<i64: 1, 128>}, {transform_indices = @transform_4, window_bounds = array<i64: 128, 128>}]} {
    %c0 = arith.constant 0 : index
    %c0_0 = arith.constant 0 : index
    %0 = vector.load %arg3[%c0, %c0_0] : memref<128x128xbf16, #tpu.memory_space<vmem>>, vector<128x128xbf16>
    %c0_1 = arith.constant 0 : index
    %c0_2 = arith.constant 0 : index
    %1 = vector.load %arg4[%c0_1, %c0_2] : memref<128x128xbf16, #tpu.memory_space<vmem>>, vector<128x128xbf16>
    %cst = arith.constant dense<0.000000e+00> : vector<128x128xf32>
    %2 = tpu.matmul %0, %1, %cst {dimension_numbers = #tpu.dot_dimension_numbers<[1], [0], [0], [1], [0, 0, 1, 1], [], []>} : vector<128x128xbf16>, vector<128x128xbf16>, vector<128x128xf32> -> vector<128x128xf32>
    %3 = arith.truncf %2 : vector<128x128xf32> to vector<128x128xbf16>
    %c0_3 = arith.constant 0 : index
    %c0_4 = arith.constant 0 : index
    %4 = vector.load %arg2[%c0_3, %c0_4] : memref<128x128xbf16, #tpu.memory_space<vmem>>, vector<128x128xbf16>
    %cst_5 = arith.constant dense<0.000000e+00> : vector<128x128xf32>
    %5 = tpu.matmul %4, %3, %cst_5 {dimension_numbers = #tpu.dot_dimension_numbers<[1], [0], [0], [1], [0, 0, 1, 1], [], []>} : vector<128x128xbf16>, vector<128x128xbf16>, vector<128x128xf32> -> vector<128x128xf32>
    %c0_6 = arith.constant 0 : index
    %c0_7 = arith.constant 0 : index
    %6 = vector.load %arg5[%c0_6, %c0_7] : memref<1x128xf32, #tpu.memory_space<vmem>>, vector<1x128xf32>
    %7 = vector.broadcast %6 : vector<1x128xf32> to vector<128x128xf32>
    %8 = arith.addf %5, %7 : vector<128x128xf32>
    %c0_8 = arith.constant 0 : index
    %c0_9 = arith.constant 0 : index
    %9 = vector.load %arg6[%c0_8, %c0_9] : memref<128x128xf32, #tpu.memory_space<vmem>>, vector<128x128xf32>
    tpu.vector_store %arg6[%c0_8, %c0_9], %8 {strides = array<i32>} : memref<128x128xf32, #tpu.memory_space<vmem>>, vector<128x128xf32>,
    return
  }
  func.func @transform_0(%arg0: i32, %arg1: i32) -> (i32, i32) {
    %c0_i32 = arith.constant 0 : i32
    %c0_i32_0 = arith.constant 0 : i32
    return %arg0, %c0_i32 : i32, i32
  }
  func.func @transform_1(%arg0: i32, %arg1: i32) -> (i32, i32) {
    %c0_i32 = arith.constant 0 : i32
    %c0_i32_0 = arith.constant 0 : i32
    %c0_i32_1 = arith.constant 0 : i32
    return %c0_i32, %c0_i32_0 : i32, i32
  }
  func.func @transform_2(%arg0: i32, %arg1: i32) -> (i32, i32) {
    %c0_i32 = arith.constant 0 : i32
    %c0_i32_0 = arith.constant 0 : i32
    return %c0_i32, %arg1 : i32, i32
  }
  func.func @transform_3(%arg0: i32, %arg1: i32) -> (i32, i32) {
    %c0_i32 = arith.constant 0 : i32
    %c0_i32_0 = arith.constant 0 : i32
    return %c0_i32, %arg1 : i32, i32
  }
  func.func @transform_4(%arg0: i32, %arg1: i32) -> (i32, i32) {
    %c0_i32 = arith.constant 0 : i32
    return %arg0, %arg1 : i32, i32
  }
}

</mosaic_0001>

<bundles_post_ra>
// kernel: tpu_custom_call.1
= control target key start
LH: loop header
LB: loop body
LE: loop exit
PB: predicated region body
PF: predicated region fallthrough
CT: control target
= control target key end

     0   :  { %9 = vsyncpa [#allocation3], 0  ;;  %s698_s0 = inlined_call_operand.hbm [shape: bf16[128,128], index: 0, kind: input, shape index: {}]   ;;  %s699_s1 = inlined_call_operand.hbm [shape: bf16[128,128], index: 1, kind: input, shape index: {}]   ;;  %s700_s2 = inlined_call_operand.hbm [shape: bf16[128,128], index: 2, kind: input, shape index: {}]   ;;  %s701_s3 = inlined_call_operand.vmem [shape: f32[1,128], index: 3, kind: input, shape index: {}]   ;;  %s702_s4 = inlined_call_operand.hbm [shape: f32[128,128], index: 4, kind: output, shape index: {}]  }
   0x1   :  { %10 = vsyncpa [#allocation6], 0 }
   0x2   :  { %11 = vsyncpa [#allocation4], 0  ;;  %s29_s17 = sshll.u32 %s699_s1, 4  ;;  %s650_s18 = smov [#allocation5]   ;;  %s30_s17 = int_to_ptr.hbm [resolvable:$true] %s29_s17 }
   0x3   :  { %s31_s19 = sshll.u32 %s650_s18, 4  ;;  %s16_s22 = sshll.u32 %s698_s0, 4  ;;  %s32_s19 = int_to_ptr.vmem [resolvable:$true] %s31_s19  ;;  %s17_s22 = int_to_ptr.hbm [resolvable:$true] %s16_s22 }
   0x4   :  { %s651_s23 = smov 64   ;;  %s652_s24 = smov 4  }
   0x5   :  { %37 = dma.hbm_to_vmem [thread:$0]  %s30_s17, 1024, %s32_s19, [#allocation6], %s651_s23, %s651_s23, %s652_s24  }
   0x6   :  { %s653_s25 = smov [#allocation2]   ;;  %s42_s29 = sshll.u32 %s700_s2, 4  ;;  %s43_s29 = int_to_ptr.hbm [resolvable:$true] %s42_s29 }
   0x7   :  { %s18_s26 = sshll.u32 %s653_s25, 4  ;;  %s654_s1 = smov [#allocation7]   ;;  %s19_s26 = int_to_ptr.vmem [resolvable:$true] %s18_s26 }
   0x8   :  { %24 = dma.hbm_to_vmem [thread:$0]  %s17_s22, 1024, %s19_s26, [#allocation3], %s651_s23, %s651_s23, %s652_s24  }
   0x9   :  { %s44_s30 = sshll.u32 %s654_s1, 4  ;;  %s45_s30 = int_to_ptr.vmem [resolvable:$true] %s44_s30 }
   0xa   :  { %50 = dma.hbm_to_vmem [thread:$0]  %s43_s29, 1024, %s45_s30, [#allocation6], %s651_s23, %s651_s23, %s652_s24  }
   0xb   :  { %644 = dma.done.wait [#allocation3], 1024  }
   0xc   :  { %645 = vsyncadd [#allocation3], 4294966272 }
   0xd   :  { %646 = dma.done.wait [#allocation6], 2048  }
   0xe   :  { %647 = vsyncadd [#allocation6], 4294965248  ;;  %v514_v0 = vld [vmem:[#allocation7 + $0x38] sm:$0xff]  ;;  %v513_v1 = vld [vmem:[#allocation7 + $0x30] sm:$0xff]  ;;  %s389_s8 = sshll.u32 %s702_s4, 4  ;;  %s656_s9 = smov 128   ;;  %s390_s8 = int_to_ptr.hbm [resolvable:$true] %s389_s8 }
   0xf   :  { %523 = vmatpush.bf16.msra.mxu2 %v514_v0  ;;  %193 = vmatpush.bf16.msra.mxu0 %v514_v0  ;;  %v512_v2 = vld [vmem:[#allocation7 + $0x28] sm:$0xff]  ;;  %v511_v3 = vld [vmem:[#allocation7 + $0x20] sm:$0xff]  ;;  %v510_v4 = vld [vmem:[#allocation7 + $0x18] sm:$0xff]  ;;  %s657_s10 = smov 8  }
  0x10   :  { %v509_v5 = vld [vmem:[#allocation7 + $0x10] sm:$0xff]  ;;  %v508_v6 = vld [vmem:[#allocation7 + $0x8] sm:$0xff]  ;;  %v507_v7 = vld [vmem:[#allocation7] sm:$0xff] }
  0x11   :  { %v503_v8 = vld [vmem:[#allocation5 + $0x20] sm:$0xff]  ;;  %v504_v10 = vld [vmem:[#allocation5 + $0x28] sm:$0xff]  ;;  %v505_v12 = vld [vmem:[#allocation5 + $0x30] sm:$0xff] }
  0x12   :  { %v499_v9 = vld [vmem:[#allocation5] sm:$0xff]  ;;  %v500_v11 = vld [vmem:[#allocation5 + $0x8] sm:$0xff]  ;;  %v501_v13 = vld [vmem:[#allocation5 + $0x10] sm:$0xff] }
  0x13   :  { %524 = vmatpush.bf16.msra.mxu2 %v513_v1  ;;  %194 = vmatpush.bf16.msra.mxu0 %v513_v1  ;;  %v506_v14 = vld [vmem:[#allocation5 + $0x38] sm:$0xff]  ;;  %v515_v40 = vld [vmem:[#allocation2] sm:$0xff]  ;;  %v516_v42 = vld [vmem:[#allocation2 + $0x8] sm:$0xff] }
  0x14   :  { %v502_v15 = vld [vmem:[#allocation5 + $0x18] sm:$0xff]  ;;  %v519_v41 = vld [vmem:[#allocation2 + $0x20] sm:$0xff]  ;;  %v520_v43 = vld [vmem:[#allocation2 + $0x28] sm:$0xff] }
  0x15   :  { %v517_v44 = vld [vmem:[#allocation2 + $0x10] sm:$0xff]  ;;  %v518_v46 = vld [vmem:[#allocation2 + $0x18] sm:$0xff]  ;;  %v547_v48 = vld [vmem:[%s701_s3] ss:$0 sm:$0xff]  ;;  %s655_s3 = smov [#allocation8]  }
  0x16   :  { %v521_v45 = vld [vmem:[#allocation2 + $0x30] sm:$0xff]  ;;  %v522_v47 = vld [vmem:[#allocation2 + $0x38] sm:$0xff]  ;;  %s387_s5 = sshll.u32 %s655_s3, 4  ;;  %s388_s5 = int_to_ptr.vmem [resolvable:$true] %s387_s5 }
  0x17   :  { %525 = vmatpush.bf16.msra.mxu2 %v512_v2  ;;  %195 = vmatpush.bf16.msra.mxu0 %v512_v2 }
  0x1b   :  { %526 = vmatpush.bf16.msra.mxu2 %v511_v3  ;;  %196 = vmatpush.bf16.msra.mxu0 %v511_v3 }
  0x1f   :  { %527 = vmatpush.bf16.msra.mxu2 %v510_v4  ;;  %197 = vmatpush.bf16.msra.mxu0 %v510_v4 }
  0x23   :  { %528 = vmatpush.bf16.msra.mxu2 %v509_v5  ;;  %198 = vmatpush.bf16.msra.mxu0 %v509_v5 }
  0x27   :  { %529 = vmatpush.bf16.msra.mxu2 %v508_v6  ;;  %199 = vmatpush.bf16.msra.mxu0 %v508_v6 }
  0x2b   :  { %530 = vmatpush.bf16.msra.mxu2 %v507_v7  ;;  %200 = vmatpush.bf16.msra.mxu0 %v507_v7 }
  0x2e   :  { %221 = vmatmul.bf16.vlgmr.msra.gmra.mxu2 %v503_v8  ;;  %201 = vmatmul.bf16.vlgmr.msra.gmra.mxu0 %v499_v9 }
  0x3e   :  { %226 = vmatmul.bf16.gmra.mxu2 %v504_v10  ;;  %206 = vmatmul.bf16.gmra.mxu0 %v500_v11 }
  0x4e   :  { %231 = vmatmul.bf16.gmra.mxu2 %v505_v12  ;;  %211 = vmatmul.bf16.gmra.mxu0 %v501_v13 }
  0x5e   :  { %236 = vmatmul.bf16.gmra.mxu2 %v506_v14  ;;  %216 = vmatmul.bf16.gmra.mxu0 %v502_v15 }
  0xab   :  { %v202_v17 = vpop.f32.mrf.mxu0 }
  0xb1   :  { %v222_v16 = vpop.f32.mrf.mxu2 }
  0xb3   :  { %v204_v19 = vpop.f32.mrf.mxu0 }
  0xb4   :  { %v242_v39 = vpack.c.bf16 %v204_v19, %v202_v17 }
  0xb9   :  { %v224_v18 = vpop.f32.mrf.mxu2 }
  0xba   :  { %v246_v34 = vpack.c.bf16 %v224_v18, %v222_v16 }
  0xbb   :  { %v207_v21 = vpop.f32.mrf.mxu0 }
  0xc1   :  { %v227_v20 = vpop.f32.mrf.mxu2 }
  0xc3   :  { %v209_v23 = vpop.f32.mrf.mxu0 }
  0xc4   :  { %v243_v38 = vpack.c.bf16 %v209_v23, %v207_v21 }
  0xc9   :  { %v229_v22 = vpop.f32.mrf.mxu2 }
  0xca   :  { %v247_v33 = vpack.c.bf16 %v229_v22, %v227_v20 }
  0xcb   :  { %v212_v25 = vpop.f32.mrf.mxu0 }
  0xd1   :  { %v232_v24 = vpop.f32.mrf.mxu2 }
  0xd3   :  { %v214_v28 = vpop.f32.mrf.mxu0 }
  0xd4   :  { %v244_v37 = vpack.c.bf16 %v214_v28, %v212_v25 }
  0xd9   :  { %v234_v26 = vpop.f32.mrf.mxu2 }
  0xda   :  { %v248_v32 = vpack.c.bf16 %v234_v26, %v232_v24 }
  0xdb   :  { %v217_v31 = vpop.f32.mrf.mxu0 }
  0xe1   :  { %v237_v27 = vpop.f32.mrf.mxu2 }
  0xe3   :  { %v219_v35 = vpop.f32.mrf.mxu0 }
  0xe4   :  { %v245_v36 = vpack.c.bf16 %v219_v35, %v217_v31 }
  0xe9   :  { %v239_v29 = vpop.f32.mrf.mxu2 }
  0xea   :  { %v249_v30 = vpack.c.bf16 %v239_v29, %v237_v27 }
  0xec   :  { %318 = vmatpush.bf16.msra.mxu1 %v249_v30  ;;  %531 = vmatpush.bf16.msra.mxu3 %v249_v30 }
  0xf0   :  { %319 = vmatpush.bf16.msra.mxu1 %v248_v32  ;;  %532 = vmatpush.bf16.msra.mxu3 %v248_v32 }
  0xf4   :  { %320 = vmatpush.bf16.msra.mxu1 %v247_v33  ;;  %533 = vmatpush.bf16.msra.mxu3 %v247_v33 }
  0xf8   :  { %321 = vmatpush.bf16.msra.mxu1 %v246_v34  ;;  %534 = vmatpush.bf16.msra.mxu3 %v246_v34 }
  0xfc   :  { %322 = vmatpush.bf16.msra.mxu1 %v245_v36  ;;  %535 = vmatpush.bf16.msra.mxu3 %v245_v36 }
 0x100   :  { %323 = vmatpush.bf16.msra.mxu1 %v244_v37  ;;  %536 = vmatpush.bf16.msra.mxu3 %v244_v37 }
 0x104   :  { %324 = vmatpush.bf16.msra.mxu1 %v243_v38  ;;  %537 = vmatpush.bf16.msra.mxu3 %v243_v38 }
 0x108   :  { %325 = vmatpush.bf16.msra.mxu1 %v242_v39  ;;  %538 = vmatpush.bf16.msra.mxu3 %v242_v39 }
 0x10b   :  { %326 = vmatmul.bf16.vlgmr.msra.gmra.mxu1 %v515_v40  ;;  %346 = vmatmul.bf16.vlgmr.msra.gmra.mxu3 %v519_v41 }
 0x11b   :  { %331 = vmatmul.bf16.gmra.mxu1 %v516_v42  ;;  %351 = vmatmul.bf16.gmra.mxu3 %v520_v43 }
 0x12b   :  { %336 = vmatmul.bf16.gmra.mxu1 %v517_v44  ;;  %356 = vmatmul.bf16.gmra.mxu3 %v521_v45 }
 0x13b   :  { %341 = vmatmul.bf16.gmra.mxu1 %v518_v46  ;;  %361 = vmatmul.bf16.gmra.mxu3 %v522_v47 }
 0x188   :  { %v327_v49 = vpop.f32.mrf.mxu1 }
 0x189   :  { %v328_v50 = vadd.f32 %v547_v48, %v327_v49 }
 0x18b   :  { %367 = vst [vmem:[#allocation8] sm:$0xff] %v328_v50 }
 0x18e   :  { %v347_v51 = vpop.f32.mrf.mxu3 }
 0x18f   :  { %v348_v52 = vadd.f32 %v547_v48, %v347_v51 }
 0x190   :  { %v329_v53 = vpop.f32.mrf.mxu1 }
 0x191   :  { %375 = vst [vmem:[#allocation8 + $0x40] sm:$0xff] %v348_v52  ;;  %v330_v54 = vadd.f32 %v547_v48, %v329_v53 }
 0x193   :  { %368 = vst [vmem:[#allocation8 + $0x8] sm:$0xff] %v330_v54 }
 0x196   :  { %v349_v55 = vpop.f32.mrf.mxu3 }
 0x197   :  { %v350_v56 = vadd.f32 %v547_v48, %v349_v55 }
 0x198   :  { %v332_v57 = vpop.f32.mrf.mxu1 }
 0x199   :  { %376 = vst [vmem:[#allocation8 + $0x48] sm:$0xff] %v350_v56  ;;  %v333_v58 = vadd.f32 %v547_v48, %v332_v57 }
 0x19b   :  { %369 = vst [vmem:[#allocation8 + $0x10] sm:$0xff] %v333_v58 }
 0x19e   :  { %v352_v59 = vpop.f32.mrf.mxu3 }
 0x19f   :  { %v353_v60 = vadd.f32 %v547_v48, %v352_v59 }
 0x1a0   :  { %v334_v61 = vpop.f32.mrf.mxu1 }
 0x1a1   :  { %377 = vst [vmem:[#allocation8 + $0x50] sm:$0xff] %v353_v60  ;;  %v335_v62 = vadd.f32 %v547_v48, %v334_v61 }
 0x1a3   :  { %370 = vst [vmem:[#allocation8 + $0x18] sm:$0xff] %v335_v62 }
 0x1a6   :  { %v354_v63 = vpop.f32.mrf.mxu3 }
 0x1a7   :  { %v355_v0 = vadd.f32 %v547_v48, %v354_v63 }
 0x1a8   :  { %v337_v1 = vpop.f32.mrf.mxu1 }
 0x1a9   :  { %378 = vst [vmem:[#allocation8 + $0x58] sm:$0xff] %v355_v0  ;;  %v338_v2 = vadd.f32 %v547_v48, %v337_v1 }
 0x1ab   :  { %371 = vst [vmem:[#allocation8 + $0x20] sm:$0xff] %v338_v2 }
 0x1ae   :  { %v357_v3 = vpop.f32.mrf.mxu3 }
 0x1af   :  { %v358_v4 = vadd.f32 %v547_v48, %v357_v3 }
 0x1b0   :  { %v339_v5 = vpop.f32.mrf.mxu1 }
 0x1b1   :  { %379 = vst [vmem:[#allocation8 + $0x60] sm:$0xff] %v358_v4  ;;  %v340_v6 = vadd.f32 %v547_v48, %v339_v5 }
 0x1b3   :  { %372 = vst [vmem:[#allocation8 + $0x28] sm:$0xff] %v340_v6 }
 0x1b6   :  { %v359_v7 = vpop.f32.mrf.mxu3 }
 0x1b7   :  { %v360_v8 = vadd.f32 %v547_v48, %v359_v7 }
 0x1b8   :  { %v342_v9 = vpop.f32.mrf.mxu1 }
 0x1b9   :  { %380 = vst [vmem:[#allocation8 + $0x68] sm:$0xff] %v360_v8  ;;  %v343_v10 = vadd.f32 %v547_v48, %v342_v9 }
 0x1bb   :  { %373 = vst [vmem:[#allocation8 + $0x30] sm:$0xff] %v343_v10 }
 0x1be   :  { %v362_v11 = vpop.f32.mrf.mxu3 }
 0x1bf   :  { %v363_v12 = vadd.f32 %v547_v48, %v362_v11 }
 0x1c0   :  { %v344_v13 = vpop.f32.mrf.mxu1 }
 0x1c1   :  { %381 = vst [vmem:[#allocation8 + $0x70] sm:$0xff] %v363_v12  ;;  %v345_v14 = vadd.f32 %v547_v48, %v344_v13 }
 0x1c3   :  { %374 = vst [vmem:[#allocation8 + $0x38] sm:$0xff] %v345_v14 }
 0x1c6   :  { %v364_v15 = vpop.f32.mrf.mxu3 }
 0x1c7   :  { %v365_v16 = vadd.f32 %v547_v48, %v364_v15 }
 0x1c9   :  { %382 = vst [vmem:[#allocation8 + $0x78] sm:$0xff] %v365_v16 }
 0x1ca   :  { %395 = dma.vmem_to_hbm [thread:$0]  %s388_s5, 2048, %s390_s8, [#allocation4], %s656_s9, %s656_s9, %s657_s10  }
 0x1cb   :  { %648 = dma.done.wait [#allocation4], 2048  }
 0x1cc   :  { %649 = vsyncadd [#allocation4], 4294965248 }
 0x1cd   :  { %400 = vsyncpa [#allocation3], 1 }
 0x1ce   :  { %401 = vsyncpa [#allocation6], 1 }
 0x1cf   :  { %402 = vsyncpa [#allocation4], 1 }

</bundles_post_ra>
